<compile_context>
chip_gen: v7x
topology: tpu7x:2x2x1
jax: 0.10.0
libtpu: 0.0.40
codegen_flags: <defaults>
</compile_context>

<pallas_src>
import functools

import jax
import jax.numpy as jnp
from jax.experimental import pallas as pl
from jax.experimental.pallas import tpu as pltpu


_LANE_WIDTH = 512        # lane-dense last dim, multiple of 128 -> unmasked stores
_TARGET_TILE_ROWS = 1024  # (1024, 512) f32 tile = 2 MiB per buffer (safe on v7x)


def _identity_kernel(x_ref, o_ref):
    # Element-wise pass-through on the current VMEM tile.
    o_ref[...] = x_ref[...]


@functools.partial(jax.jit, static_argnames=())
def reconstruction_loss_term_forward(image: jax.Array) -> jax.Array:
    """Pallas 'forward' of the abstract ReconstructionLossTerm base class.

    image: float32 NCHW array. Returns an array of identical shape/dtype,
    produced by the Pallas kernel (identity, since the base class defines no
    computation).
    """
    orig_shape = image.shape
    total = int(image.size)
    lanes = _LANE_WIDTH

    # Rows needed at 512 lanes, rounded up to a multiple of 8 (f32 sublane tile).
    rows = -(-total // lanes)
    rows_rounded = ((rows + 7) // 8) * 8

    # Tile rows: big (2 MiB/buffer) when the image is large, otherwise the whole
    # (padded) slab.  Always a multiple of 8.
    tile_rows = min(_TARGET_TILE_ROWS, rows_rounded)

    # Pad the slab so the tile divides it exactly -> regular grid, no tail block.
    rows_padded = ((rows_rounded + tile_rows - 1) // tile_rows) * tile_rows
    padded_total = rows_padded * lanes

    flat = jnp.ravel(image)
    if padded_total != total:
        flat = jnp.pad(flat, (0, padded_total - total))
    flat = flat.reshape(rows_padded, lanes)

    grid = (rows_padded // tile_rows,)

    out_flat = pl.pallas_call(
        _identity_kernel,
        out_shape=jax.ShapeDtypeStruct((rows_padded, lanes), image.dtype),
        grid=grid,
        in_specs=[pl.BlockSpec((tile_rows, lanes), lambda i: (i, 0))],
        out_specs=pl.BlockSpec((tile_rows, lanes), lambda i: (i, 0)),
        # `flat` is an in-jit intermediate, so aliasing it to the output is a
        # free buffer reuse: halves HBM traffic for the identity path.
        input_output_aliases={0: 0},
        compiler_params=pltpu.CompilerParams(
            dimension_semantics=("parallel",),
        ),
    )(flat)

    return out_flat.reshape(-1)[:total].reshape(orig_shape)


class ReconstructionLossTerm:
    """JAX/Pallas mirror of the abstract PyTorch base class."""

    def __init__(self):
        # Source module's __init__ defines no parameters.
        pass

    def forward(self, image):
        # Base class forward raises NotImplementedError in PyTorch; here we
        # run the identity Pallas pass over the image (the only well-defined
        # data path of the interface).
        return reconstruction_loss_term_forward(image)

    def gradient(self, image):
        raise NotImplementedError  # abstract in source module

    def hessian(self, image, image_input):
        raise NotImplementedError  # abstract in source module


if __name__ == "__main__":
    key = jax.random.PRNGKey(0)
    # Small NCHW image consistent with an image-reconstruction loss term.
    x = jax.random.normal(key, (2, 4, 16, 16), dtype=jnp.float32)

    term = ReconstructionLossTerm()
    y = term.forward(x)
    y = jax.block_until_ready(y)

    assert y.shape == x.shape and y.dtype == x.dtype
    assert bool(jnp.allclose(y, x)), "identity pass-through mismatch"

    # Also exercise a shape whose element count is NOT a multiple of 128
    # (previously rejected by a hard assert).
    x2 = jax.random.normal(key, (3, 3, 17, 17), dtype=jnp.float32)
    y2 = jax.block_until_ready(term.forward(x2))
    assert y2.shape == x2.shape and bool(jnp.allclose(y2, x2))

    print("KERNEL_OK")
</pallas_src>

<mosaic_0001>
module attributes {stable_mosaic.version = 11 : i64} {
  func.func @_identity_kernel(%arg0: i32, %arg1: memref<8x512xf32, #tpu.memory_space<vmem>>, %arg2: memref<8x512xf32, #tpu.memory_space<vmem>>) attributes {dimension_semantics = [#tpu.dimension_semantics<parallel>], iteration_bounds = array<i64: 1>, scalar_prefetch = 0 : i64, scratch_operands = 0 : i64, tpu.core_type = #tpu.core_type<tc>, window_params = [{transform_indices = @transform_0, window_bounds = array<i64: 8, 512>}, {transform_indices = @transform_1, window_bounds = array<i64: 8, 512>}]} {
    %c0 = arith.constant 0 : index
    %c0_0 = arith.constant 0 : index
    %0 = vector.load %arg1[%c0, %c0_0] : memref<8x512xf32, #tpu.memory_space<vmem>>, vector<8x512xf32>
    %c0_1 = arith.constant 0 : index
    %c0_2 = arith.constant 0 : index
    %1 = vector.load %arg2[%c0_1, %c0_2] : memref<8x512xf32, #tpu.memory_space<vmem>>, vector<8x512xf32>
    tpu.vector_store %arg2[%c0_1, %c0_2], %0 {strides = array<i32>} : memref<8x512xf32, #tpu.memory_space<vmem>>, vector<8x512xf32>,
    return
  }
  func.func @transform_0(%arg0: i32) -> (i32, i32) {
    %c0_i32 = arith.constant 0 : i32
    %c0_i32_0 = arith.constant 0 : i32
    return %arg0, %c0_i32 : i32, i32
  }
  func.func @transform_1(%arg0: i32) -> (i32, i32) {
    %c0_i32 = arith.constant 0 : i32
    %c0_i32_0 = arith.constant 0 : i32
    return %arg0, %c0_i32 : i32, i32
  }
}

</mosaic_0001>

<bundles_post_ra>
// kernel: reconstruction_loss_term_forward.1
= control target key start
LH: loop header
LB: loop body
LE: loop exit
PB: predicated region body
PF: predicated region fallthrough
CT: control target
= control target key end

     0   :  { %s54_s0 = inlined_call_operand.vmem [shape: f32[8,512], index: 0, kind: input, shape index: {}, may-alias: {0,1}]   ;;  %s55_s1 = inlined_call_operand.vmem [shape: f32[8,512], index: 1, kind: output, shape index: {}, may-alias: {0,1}]  }
   0x1   :  { %v8_v0 = vld [vmem:[%s54_s0] sm:$0xff]  ;;  %v9_v1 = vld [vmem:[%s54_s0 + $0x8] sm:$0xff]  ;;  %v10_v2 = vld [vmem:[%s54_s0 + $0x10] sm:$0xff] }
   0x2   :  { %12 = vst [vmem:[%s55_s1] sm:$0xff] %v8_v0  ;;  %13 = vst [vmem:[%s55_s1 + $0x8] sm:$0xff] %v9_v1 }
   0x3   :  { %14 = vst [vmem:[%s55_s1 + $0x10] sm:$0xff] %v10_v2 }
   0xa   :  { %v11_v3 = vld [vmem:[%s54_s0 + $0x18] sm:$0xff] }
   0xb   :  { %15 = vst [vmem:[%s55_s1 + $0x18] sm:$0xff] %v11_v3 }

</bundles_post_ra>
